<compile_context>
chip_gen: v6e
topology: v6e:2x2x1
jax: 0.10.0
libtpu: 0.0.40
codegen_flags: <defaults>
</compile_context>

<pallas_src>
import functools

import jax
import jax.numpy as jnp
from jax.experimental import pallas as pl
from jax.experimental.pallas import tpu as pltpu


def _round_up(x, m):
    return (x + m - 1) // m * m


def _focal_kernel(logits_ref, labels_ref, o_ref, *,
                  hw_valid, n_classes, alpha, gamma, eps, tiles_per):
    """One (batch, spatial-split, spatial-tile) grid step.

    logits_ref: (1, C, R, 128) native dtype   labels_ref: (1, R, 128) i32
    o_ref:      (1, 1, 8, 128) f32            (per-(b, s) partial-sum block)
    """
    s = pl.program_id(1)
    t = pl.program_id(2)

    @pl.when(t == 0)
    def _():
        o_ref[...] = jnp.zeros_like(o_ref)

    y = labels_ref[0]                                    # (R, 128) int32
    R = y.shape[0]
    eps_f = jnp.float32(eps)

    # Pass 1: per-pixel max over the class axis (native dtype, cast once).
    # Clamping after the max == max of clamped logits.
    xm = logits_ref[0, 0]
    for c in range(1, n_classes):
        xm = jnp.maximum(xm, logits_ref[0, c])
    m = jnp.maximum(xm.astype(jnp.float32), eps_f)       # (R, 128) f32

    # Pass 2 (fused): exp/denominator + where-select of the true-class logit
    # and per-pixel alpha.  No (C, R, 128) temp is materialized.
    uniform_alpha = all(float(a) == 1.0 for a in alpha)
    denom = jnp.zeros_like(m)
    x_true = jnp.zeros_like(m)
    a_pix = None if uniform_alpha else jnp.full_like(m, jnp.float32(alpha[0]))
    for c in range(n_classes):
        x_c = jnp.maximum(logits_ref[0, c].astype(jnp.float32), eps_f)
        denom = denom + jnp.exp(x_c - m)
        sel = y == c
        x_true = jnp.where(sel, x_c, x_true)
        if (not uniform_alpha) and c > 0:
            a_pix = jnp.where(sel, jnp.float32(alpha[c]), a_pix)

    # Log-space pt: no divide, safe when the true-class probability underflows.
    logpt = (x_true - m) - jnp.log(denom)                # (R, 128)
    pt = jnp.exp(logpt)

    g = float(gamma)
    one_minus_pt = 1.0 - pt
    if g == 0.0:
        mod = jnp.ones_like(pt)
    elif g == 1.0:
        mod = one_minus_pt
    elif g == 2.0:
        mod = one_minus_pt * one_minus_pt
    else:
        mod = jnp.power(one_minus_pt, jnp.float32(g))

    loss = -(mod * logpt) if uniform_alpha else -(a_pix * mod * logpt)

    # Accumulate vreg-shaped (8, 128) partial sums directly into the resident
    # output block.  The padding mask (pixels >= H*W, including boundary-block
    # overhang garbage) is only applied on tiles that actually need it.
    limit = hw_valid - (s * tiles_per + t) * (R * 128)   # scalar, int32

    def _acc(vals):
        o_ref[...] += jnp.sum(vals.reshape(R // 8, 8, 128), axis=0)[None, None]

    @pl.when(limit >= R * 128)
    def _():
        _acc(loss)

    @pl.when(limit < R * 128)
    def _():
        row = jax.lax.broadcasted_iota(jnp.int32, (R, 128), 0)
        col = jax.lax.broadcasted_iota(jnp.int32, (R, 128), 1)
        # Select (not multiply): garbage/NaN from overhang must not propagate.
        _acc(jnp.where(row * 128 + col < limit, loss, jnp.float32(0.0)))


def focal_loss(logits, true, *, alpha=None, gamma=1, eps=1e-12,
               block_pixel_rows=4096):
    """Pallas implementation of `_FocalLoss.forward`.

    logits: (B, C, H, W) float array (f32 or bf16, streamed in native dtype);
    true:   (B, 1, H, W) or (B, H, W) integer class labels.
    Returns a scalar float32 loss (mean over all B*H*W pixels).
    """
    logits = jnp.asarray(logits)
    B, C, H, W = logits.shape
    HW = H * W
    N = B * HW

    x = logits.reshape(B, C, HW)                  # keep native dtype
    labels = jnp.asarray(true).reshape(B, HW).astype(jnp.int32)

    # alpha table: ones(class_num) by default, or [1-a, a] for scalar a
    # (mirrors the module's binary-only alpha buffer).
    if alpha is None:
        alpha_tab = tuple(1.0 for _ in range(C))
    else:
        if C != 2:
            raise ValueError("scalar alpha only supports 2 classes (as in the module)")
        alpha_tab = (1.0 - float(alpha), float(alpha))

    # Lane-dense spatial slab: rows of 128 pixels.  Pad only to a multiple of
    # 128 (plus a 16-row floor for tiny inputs); ragged last tiles are handled
    # in-kernel, so no extra HBM copy for large inputs already 128-aligned.
    n_rows = pl.cdiv(HW, 128)
    rows_padded = max(n_rows, 16)
    hw_pad = rows_padded * 128
    if hw_pad != HW:
        x = jnp.pad(x, ((0, 0), (0, 0), (0, hw_pad - HW)))
        labels = jnp.pad(labels, ((0, 0), (0, hw_pad - HW)))
    x = x.reshape(B, C, rows_padded, 128)
    labels = labels.reshape(B, rows_padded, 128)

    # Block rows: multiple of 16 (bf16 sublane tile), ~5 MiB of VMEM per step
    # (logits + labels), never larger than needed for the padded row count.
    itemsize = jnp.dtype(x.dtype).itemsize
    bytes_per_row = 128 * (C * itemsize + 4)
    budget_rows = max(16, ((5 << 20) // bytes_per_row) // 16 * 16)
    r_blk = min(max(16, int(block_pixel_rows) // 16 * 16),
                budget_rows,
                max(16, rows_padded // 16 * 16))
    n_tiles = pl.cdiv(rows_padded, r_blk)

    # v7x has 2 TensorCores: split the spatial axis into an extra parallel
    # grid dim so both get work when B == 1 (harmless no-op on v5e/v6e).
    n_split = 2 if (B == 1 and n_tiles >= 2) else 1
    tiles_per = pl.cdiv(n_tiles, n_split)

    def lg_map(b, s, t):
        j = jnp.minimum(s * tiles_per + t, n_tiles - 1)   # clamp OOB steps
        return (b, 0, j, 0)

    def lb_map(b, s, t):
        j = jnp.minimum(s * tiles_per + t, n_tiles - 1)
        return (b, j, 0)

    partials = pl.pallas_call(
        functools.partial(_focal_kernel, hw_valid=HW, n_classes=C,
                          alpha=alpha_tab, gamma=float(gamma), eps=float(eps),
                          tiles_per=tiles_per),
        out_shape=jax.ShapeDtypeStruct((B, n_split, 8, 128), jnp.float32),
        grid_spec=pltpu.PrefetchScalarGridSpec(
            num_scalar_prefetch=0,
            grid=(B, n_split, tiles_per),
            in_specs=[
                pl.BlockSpec((1, C, r_blk, 128), lg_map),
                pl.BlockSpec((1, r_blk, 128), lb_map),
            ],
            out_specs=pl.BlockSpec((1, 1, 8, 128), lambda b, s, t: (b, s, 0, 0)),
        ),
        compiler_params=pltpu.CompilerParams(
            dimension_semantics=("parallel", "parallel", "arbitrary"),
            vmem_limit_bytes=32 * 1024 * 1024,
        ),
    )(x, labels)

    # Tiny final reduction + mean outside the kernel.
    return jnp.sum(partials) / jnp.float32(N)


def _reference(logits, true, alpha, gamma, eps=1e-12):
    """Plain-JAX reference mirroring the PyTorch module's math."""
    logits = jnp.asarray(logits, jnp.float32)
    B, C, H, W = logits.shape
    x = jnp.maximum(logits, eps)
    probs = jax.nn.softmax(x, axis=1)
    lab = jnp.asarray(true).reshape(B, H, W)
    onehot = jnp.transpose(jax.nn.one_hot(lab, C, dtype=jnp.float32),
                           (0, 3, 1, 2))
    pt = jnp.sum(probs * onehot, axis=1).reshape(-1)
    logpt = jnp.log(pt)
    if alpha is None:
        a_tab = jnp.ones((C,), jnp.float32)
    else:
        a_tab = jnp.array([1.0 - alpha, alpha], jnp.float32)
    a = a_tab[lab.reshape(-1)]
    return jnp.mean(-a * (1.0 - pt) ** gamma * logpt)


if __name__ == "__main__":
    key = jax.random.PRNGKey(0)
    k1, k2, k3, k4 = jax.random.split(key, 4)

    # Test 1: defaults (alpha=None, gamma=1), f32 logits, small shape.
    B, C, H, W = 2, 4, 16, 16
    logits = jax.random.normal(k1, (B, C, H, W), dtype=jnp.float32)
    true = jax.random.randint(k2, (B, 1, H, W), 0, C, dtype=jnp.int32)
    loss = focal_loss(logits, true, alpha=None, gamma=1)
    jax.block_until_ready(loss)
    ref = _reference(logits, true, None, 1)
    assert jnp.allclose(loss, ref, rtol=1e-4, atol=1e-5), (loss, ref)

    # Test 2: bf16 streaming, scalar alpha, gamma=2, B == 1 with ragged tiles
    # (exercises the dual-TC spatial split, boundary-block reads and masking).
    B2, C2, H2, W2 = 1, 2, 72, 72
    logits2 = jax.random.normal(k3, (B2, C2, H2, W2), dtype=jnp.bfloat16)
    true2 = jax.random.randint(k4, (B2, 1, H2, W2), 0, C2, dtype=jnp.int32)
    loss2 = focal_loss(logits2, true2, alpha=0.25, gamma=2, block_pixel_rows=16)
    jax.block_until_ready(loss2)
    ref2 = _reference(logits2, true2, 0.25, 2)
    assert jnp.allclose(loss2, ref2, rtol=1e-3, atol=1e-5), (loss2, ref2)

    print("KERNEL_OK")
</pallas_src>

<mosaic_0001>
module attributes {stable_mosaic.version = 11 : i64} {
  func.func @_focal_kernel(%arg0: i32, %arg1: i32, %arg2: i32, %arg3: memref<1x4x16x128xf32, #tpu.memory_space<vmem>>, %arg4: memref<1x16x128xi32, #tpu.memory_space<vmem>>, %arg5: memref<1x1x8x128xf32, #tpu.memory_space<vmem>>) attributes {dimension_semantics = [#tpu.dimension_semantics<parallel>, #tpu.dimension_semantics<parallel>, #tpu.dimension_semantics<arbitrary>], iteration_bounds = array<i64: 2, 1, 1>, scalar_prefetch = 0 : i64, scratch_operands = 0 : i64, tpu.core_type = #tpu.core_type<tc>, window_params = [{transform_indices = @transform_0, window_bounds = array<i64: 1, 4, 16, 128>}, {transform_indices = @transform_1, window_bounds = array<i64: 1, 16, 128>}, {transform_indices = @transform_2, window_bounds = array<i64: 1, 1, 8, 128>}]} {
    %c0_i32 = arith.constant 0 : i32
    %0 = arith.cmpi eq, %arg2, %c0_i32 : i32
    %1 = arith.extui %0 : i1 to i32
    %c0_i32_0 = arith.constant 0 : i32
    %2 = arith.cmpi ne, %1, %c0_i32_0 : i32
    scf.if %2 {
      %cst_46 = arith.constant 0.000000e+00 : f32
      %79 = vector.broadcast %cst_46 : f32 to vector<1x1x8x128xf32>
      %c0_47 = arith.constant 0 : index
      %c0_48 = arith.constant 0 : index
      %c0_49 = arith.constant 0 : index
      %c0_50 = arith.constant 0 : index
      %80 = vector.load %arg5[%c0_47, %c0_48, %c0_49, %c0_50] : memref<1x1x8x128xf32, #tpu.memory_space<vmem>>, vector<1x1x8x128xf32>
      tpu.vector_store %arg5[%c0_47, %c0_48, %c0_49, %c0_50], %79 {strides = array<i32>} : memref<1x1x8x128xf32, #tpu.memory_space<vmem>>, vector<1x1x8x128xf32>,
    } else {
    }
    %c0 = arith.constant 0 : index
    %c0_1 = arith.constant 0 : index
    %c0_2 = arith.constant 0 : index
    %3 = vector.load %arg4[%c0, %c0_1, %c0_2] : memref<1x16x128xi32, #tpu.memory_space<vmem>>, vector<1x16x128xi32>
    %4 = vector.shape_cast %3 : vector<1x16x128xi32> to vector<16x128xi32>
    %c0_3 = arith.constant 0 : index
    %c0_4 = arith.constant 0 : index
    %c0_5 = arith.constant 0 : index
    %c0_6 = arith.constant 0 : index
    %5 = vector.load %arg3[%c0_3, %c0_4, %c0_5, %c0_6] : memref<1x4x16x128xf32, #tpu.memory_space<vmem>>, vector<1x1x16x128xf32>
    %6 = vector.shape_cast %5 : vector<1x1x16x128xf32> to vector<16x128xf32>
    %c0_7 = arith.constant 0 : index
    %c1 = arith.constant 1 : index
    %c0_8 = arith.constant 0 : index
    %c0_9 = arith.constant 0 : index
    %7 = vector.load %arg3[%c0_7, %c1, %c0_8, %c0_9] : memref<1x4x16x128xf32, #tpu.memory_space<vmem>>, vector<1x1x16x128xf32>
    %8 = vector.shape_cast %7 : vector<1x1x16x128xf32> to vector<16x128xf32>
    %9 = arith.maximumf %6, %8 : vector<16x128xf32>
    %c0_10 = arith.constant 0 : index
    %c2 = arith.constant 2 : index
    %c0_11 = arith.constant 0 : index
    %c0_12 = arith.constant 0 : index
    %10 = vector.load %arg3[%c0_10, %c2, %c0_11, %c0_12] : memref<1x4x16x128xf32, #tpu.memory_space<vmem>>, vector<1x1x16x128xf32>
    %11 = vector.shape_cast %10 : vector<1x1x16x128xf32> to vector<16x128xf32>
    %12 = arith.maximumf %9, %11 : vector<16x128xf32>
    %c0_13 = arith.constant 0 : index
    %c3 = arith.constant 3 : index
    %c0_14 = arith.constant 0 : index
    %c0_15 = arith.constant 0 : index
    %13 = vector.load %arg3[%c0_13, %c3, %c0_14, %c0_15] : memref<1x4x16x128xf32, #tpu.memory_space<vmem>>, vector<1x1x16x128xf32>
    %14 = vector.shape_cast %13 : vector<1x1x16x128xf32> to vector<16x128xf32>
    %15 = arith.maximumf %12, %14 : vector<16x128xf32>
    %cst = arith.constant 9.99999996E-13 : f32
    %16 = vector.broadcast %cst : f32 to vector<16x128xf32>
    %17 = arith.maximumf %15, %16 : vector<16x128xf32>
    %cst_16 = arith.constant 0.000000e+00 : f32
    %18 = vector.broadcast %cst_16 : f32 to vector<16x128xf32>
    %cst_17 = arith.constant 0.000000e+00 : f32
    %19 = vector.broadcast %cst_17 : f32 to vector<16x128xf32>
    %c0_18 = arith.constant 0 : index
    %c0_19 = arith.constant 0 : index
    %c0_20 = arith.constant 0 : index
    %c0_21 = arith.constant 0 : index
    %20 = vector.load %arg3[%c0_18, %c0_19, %c0_20, %c0_21] : memref<1x4x16x128xf32, #tpu.memory_space<vmem>>, vector<1x1x16x128xf32>
    %21 = vector.shape_cast %20 : vector<1x1x16x128xf32> to vector<16x128xf32>
    %cst_22 = arith.constant 9.99999996E-13 : f32
    %22 = vector.broadcast %cst_22 : f32 to vector<16x128xf32>
    %23 = arith.maximumf %21, %22 : vector<16x128xf32>
    %24 = arith.subf %23, %17 : vector<16x128xf32>
    %25 = math.exp %24 : vector<16x128xf32>
    %26 = arith.addf %18, %25 : vector<16x128xf32>
    %c0_i32_23 = arith.constant 0 : i32
    %27 = vector.broadcast %c0_i32_23 : i32 to vector<16x128xi32>
    %28 = arith.cmpi eq, %4, %27 : vector<16x128xi32>
    %29 = arith.select %28, %23, %19 : vector<16x128xi1>, vector<16x128xf32>
    %c0_24 = arith.constant 0 : index
    %c1_25 = arith.constant 1 : index
    %c0_26 = arith.constant 0 : index
    %c0_27 = arith.constant 0 : index
    %30 = vector.load %arg3[%c0_24, %c1_25, %c0_26, %c0_27] : memref<1x4x16x128xf32, #tpu.memory_space<vmem>>, vector<1x1x16x128xf32>
    %31 = vector.shape_cast %30 : vector<1x1x16x128xf32> to vector<16x128xf32>
    %cst_28 = arith.constant 9.99999996E-13 : f32
    %32 = vector.broadcast %cst_28 : f32 to vector<16x128xf32>
    %33 = arith.maximumf %31, %32 : vector<16x128xf32>
    %34 = arith.subf %33, %17 : vector<16x128xf32>
    %35 = math.exp %34 : vector<16x128xf32>
    %36 = arith.addf %26, %35 : vector<16x128xf32>
    %c1_i32 = arith.constant 1 : i32
    %37 = vector.broadcast %c1_i32 : i32 to vector<16x128xi32>
    %38 = arith.cmpi eq, %4, %37 : vector<16x128xi32>
    %39 = arith.select %38, %33, %29 : vector<16x128xi1>, vector<16x128xf32>
    %c0_29 = arith.constant 0 : index
    %c2_30 = arith.constant 2 : index
    %c0_31 = arith.constant 0 : index
    %c0_32 = arith.constant 0 : index
    %40 = vector.load %arg3[%c0_29, %c2_30, %c0_31, %c0_32] : memref<1x4x16x128xf32, #tpu.memory_space<vmem>>, vector<1x1x16x128xf32>
    %41 = vector.shape_cast %40 : vector<1x1x16x128xf32> to vector<16x128xf32>
    %cst_33 = arith.constant 9.99999996E-13 : f32
    %42 = vector.broadcast %cst_33 : f32 to vector<16x128xf32>
    %43 = arith.maximumf %41, %42 : vector<16x128xf32>
    %44 = arith.subf %43, %17 : vector<16x128xf32>
    %45 = math.exp %44 : vector<16x128xf32>
    %46 = arith.addf %36, %45 : vector<16x128xf32>
    %c2_i32 = arith.constant 2 : i32
    %47 = vector.broadcast %c2_i32 : i32 to vector<16x128xi32>
    %48 = arith.cmpi eq, %4, %47 : vector<16x128xi32>
    %49 = arith.select %48, %43, %39 : vector<16x128xi1>, vector<16x128xf32>
    %c0_34 = arith.constant 0 : index
    %c3_35 = arith.constant 3 : index
    %c0_36 = arith.constant 0 : index
    %c0_37 = arith.constant 0 : index
    %50 = vector.load %arg3[%c0_34, %c3_35, %c0_36, %c0_37] : memref<1x4x16x128xf32, #tpu.memory_space<vmem>>, vector<1x1x16x128xf32>
    %51 = vector.shape_cast %50 : vector<1x1x16x128xf32> to vector<16x128xf32>
    %cst_38 = arith.constant 9.99999996E-13 : f32
    %52 = vector.broadcast %cst_38 : f32 to vector<16x128xf32>
    %53 = arith.maximumf %51, %52 : vector<16x128xf32>
    %54 = arith.subf %53, %17 : vector<16x128xf32>
    %55 = math.exp %54 : vector<16x128xf32>
    %56 = arith.addf %46, %55 : vector<16x128xf32>
    %c3_i32 = arith.constant 3 : i32
    %57 = vector.broadcast %c3_i32 : i32 to vector<16x128xi32>
    %58 = arith.cmpi eq, %4, %57 : vector<16x128xi32>
    %59 = arith.select %58, %53, %49 : vector<16x128xi1>, vector<16x128xf32>
    %60 = arith.subf %59, %17 : vector<16x128xf32>
    %61 = math.log %56 : vector<16x128xf32>
    %62 = arith.subf %60, %61 : vector<16x128xf32>
    %63 = math.exp %62 : vector<16x128xf32>
    %cst_39 = arith.constant 1.000000e+00 : f32
    %64 = vector.broadcast %cst_39 : f32 to vector<16x128xf32>
    %65 = arith.subf %64, %63 : vector<16x128xf32>
    %66 = arith.mulf %65, %62 : vector<16x128xf32>
    %cst_40 = arith.constant 0.000000e+00 : f32
    %67 = vector.broadcast %cst_40 : f32 to vector<16x128xf32>
    %68 = arith.subf %67, %66 : vector<16x128xf32>
    %c1_i32_41 = arith.constant 1 : i32
    %69 = arith.muli %arg1, %c1_i32_41 : i32
    %70 = arith.addi %69, %arg2 : i32
    %c2048_i32 = arith.constant 2048 : i32
    %71 = arith.muli %70, %c2048_i32 : i32
    %c256_i32 = arith.constant 256 : i32
    %72 = arith.subi %c256_i32, %71 : i32
    %c2048_i32_42 = arith.constant 2048 : i32
    %73 = arith.cmpi sge, %72, %c2048_i32_42 : i32
    %74 = arith.extui %73 : i1 to i32
    %c0_i32_43 = arith.constant 0 : i32
    %75 = arith.cmpi ne, %74, %c0_i32_43 : i32
    scf.if %75 {
      %c0_46 = arith.constant 0 : index
      %c0_47 = arith.constant 0 : index
      %c0_48 = arith.constant 0 : index
      %c0_49 = arith.constant 0 : index
      %79 = vector.load %arg5[%c0_46, %c0_47, %c0_48, %c0_49] : memref<1x1x8x128xf32, #tpu.memory_space<vmem>>, vector<1x1x8x128xf32>
      %80 = vector.shape_cast %68 : vector<16x128xf32> to vector<2x8x128xf32>
      %cst_50 = arith.constant dense<0.000000e+00> : vector<8x128xf32>
      %81 = vector.multi_reduction <add>, %80, %cst_50 [0] : vector<2x8x128xf32> to vector<8x128xf32>
      %82 = vector.shape_cast %81 : vector<8x128xf32> to vector<1x1x8x128xf32>
      %83 = arith.addf %79, %82 : vector<1x1x8x128xf32>
      %c0_51 = arith.constant 0 : index
      %c0_52 = arith.constant 0 : index
      %c0_53 = arith.constant 0 : index
      %c0_54 = arith.constant 0 : index
      %84 = vector.load %arg5[%c0_51, %c0_52, %c0_53, %c0_54] : memref<1x1x8x128xf32, #tpu.memory_space<vmem>>, vector<1x1x8x128xf32>
      tpu.vector_store %arg5[%c0_51, %c0_52, %c0_53, %c0_54], %83 {strides = array<i32>} : memref<1x1x8x128xf32, #tpu.memory_space<vmem>>, vector<1x1x8x128xf32>,
    } else {
    }
    %c2048_i32_44 = arith.constant 2048 : i32
    %76 = arith.cmpi slt, %72, %c2048_i32_44 : i32
    %77 = arith.extui %76 : i1 to i32
    %c0_i32_45 = arith.constant 0 : i32
    %78 = arith.cmpi ne, %77, %c0_i32_45 : i32
    scf.if %78 {
      %79 = tpu.iota {dimensions = array<i32: 0>} : vector<16x128xi32>
      %80 = tpu.iota {dimensions = array<i32: 1>} : vector<16x128xi32>
      %c128_i32 = arith.constant 128 : i32
      %81 = vector.broadcast %c128_i32 : i32 to vector<16x128xi32>
      %82 = arith.muli %79, %81 : vector<16x128xi32>
      %83 = arith.addi %82, %80 : vector<16x128xi32>
      %84 = vector.broadcast %72 : i32 to vector<16x128xi32>
      %85 = arith.cmpi slt, %83, %84 : vector<16x128xi32>
      %cst_46 = arith.constant 0.000000e+00 : f32
      %86 = vector.broadcast %cst_46 : f32 to vector<16x128xf32>
      %87 = arith.select %85, %68, %86 : vector<16x128xi1>, vector<16x128xf32>
      %c0_47 = arith.constant 0 : index
      %c0_48 = arith.constant 0 : index
      %c0_49 = arith.constant 0 : index
      %c0_50 = arith.constant 0 : index
      %88 = vector.load %arg5[%c0_47, %c0_48, %c0_49, %c0_50] : memref<1x1x8x128xf32, #tpu.memory_space<vmem>>, vector<1x1x8x128xf32>
      %89 = vector.shape_cast %87 : vector<16x128xf32> to vector<2x8x128xf32>
      %cst_51 = arith.constant dense<0.000000e+00> : vector<8x128xf32>
      %90 = vector.multi_reduction <add>, %89, %cst_51 [0] : vector<2x8x128xf32> to vector<8x128xf32>
      %91 = vector.shape_cast %90 : vector<8x128xf32> to vector<1x1x8x128xf32>
      %92 = arith.addf %88, %91 : vector<1x1x8x128xf32>
      %c0_52 = arith.constant 0 : index
      %c0_53 = arith.constant 0 : index
      %c0_54 = arith.constant 0 : index
      %c0_55 = arith.constant 0 : index
      %93 = vector.load %arg5[%c0_52, %c0_53, %c0_54, %c0_55] : memref<1x1x8x128xf32, #tpu.memory_space<vmem>>, vector<1x1x8x128xf32>
      tpu.vector_store %arg5[%c0_52, %c0_53, %c0_54, %c0_55], %92 {strides = array<i32>} : memref<1x1x8x128xf32, #tpu.memory_space<vmem>>, vector<1x1x8x128xf32>,
    } else {
    }
    return
  }
  func.func @transform_0(%arg0: i32, %arg1: i32, %arg2: i32) -> (i32, i32, i32, i32) {
    %c1_i32 = arith.constant 1 : i32
    %0 = arith.muli %arg1, %c1_i32 : i32
    %1 = arith.addi %0, %arg2 : i32
    %c0_i32 = arith.constant 0 : i32
    %2 = arith.minsi %1, %c0_i32 : i32
    %c0_i32_0 = arith.constant 0 : i32
    %c0_i32_1 = arith.constant 0 : i32
    %c0_i32_2 = arith.constant 0 : i32
    return %arg0, %c0_i32_0, %2, %c0_i32_1 : i32, i32, i32, i32
  }
  func.func @transform_1(%arg0: i32, %arg1: i32, %arg2: i32) -> (i32, i32, i32) {
    %c1_i32 = arith.constant 1 : i32
    %0 = arith.muli %arg1, %c1_i32 : i32
    %1 = arith.addi %0, %arg2 : i32
    %c0_i32 = arith.constant 0 : i32
    %2 = arith.minsi %1, %c0_i32 : i32
    %c0_i32_0 = arith.constant 0 : i32
    %c0_i32_1 = arith.constant 0 : i32
    return %arg0, %2, %c0_i32_0 : i32, i32, i32
  }
  func.func @transform_2(%arg0: i32, %arg1: i32, %arg2: i32) -> (i32, i32, i32, i32) {
    %c0_i32 = arith.constant 0 : i32
    %c0_i32_0 = arith.constant 0 : i32
    %c0_i32_1 = arith.constant 0 : i32
    return %arg0, %arg1, %c0_i32, %c0_i32_0 : i32, i32, i32, i32
  }
}

</mosaic_0001>

<bundles_post_ra>
// kernel: tpu_custom_call.1
= control target key start
LH: loop header
LB: loop body
LE: loop exit
PB: predicated region body
PF: predicated region fallthrough
CT: control target
= control target key end

     0   :  { %7 = vsyncpa [#allocation3], 0  ;;  %s1011_s0 = inlined_call_operand.hbm [shape: f32[2,4,16,128], index: 0, kind: input, shape index: {}]   ;;  %s1012_s1 = inlined_call_operand.hbm [shape: s32[2,16,128], index: 1, kind: input, shape index: {}]   ;;  %s1013_s2 = inlined_call_operand.hbm [shape: f32[2,1,8,128], index: 2, kind: output, shape index: {}]  }
   0x1   :  { %9 = vsyncpa [#allocation3 + $0x1], 0 }
   0x2   :  { %10 = vsyncpa [#allocation6], 0 }
   0x3   :  { %12 = vsyncpa [#allocation6 + $0x1], 0 }
   0x4   :  { %13 = vsyncpa [#allocation4], 0 }
   0x5   :  { %15 = vsyncpa [#allocation4 + $0x1], 0  ;;  %s798_s9 = smov 0   ;;  %s800_s10 = smov 0  }
   0x6   :  { %s802_s11 = smov 0   ;;  %s804_s12 = smov 0  }
   0x7   :  { %s806_s13 = smov 0   ;;  %s808_s14 = smov 0  }
   0x8 LB: > { %s516_s15 = sadd.s32 4294967295, %s776_s14   ;;  %s517_s16 = sadd.s32 4294967294, %s776_s14   ;;  %s776_s14 = sphi %s808_s14, %s21_s14   ;;  %s772_s13 = sphi %s806_s13, %s1025_s13   ;;  %s768_s12 = sphi %s804_s12, %s1024_s12   ;;  %s764_s11 = sphi %s802_s11, %s1023_s11   ;;  %s760_s10 = sphi %s800_s10, %s1022_s10   ;;  %s756_s9 = sphi %s798_s9, %s1021_s9  }
   0x9   : > { %s40_s17 = sadd.s32 1, %s772_s13  ;;  %s55_s18 = sadd.s32 1, %s764_s11 }
   0xa   : > { %p42_p0 = scmp.ge.s32.totalorder %s40_s17, 2  ;;  %p62_p1 = scmp.ne.s32.totalorder %s764_s11, %s760_s10 }
   0xb   : > { %p63_p2 = scmp.eq.s32.totalorder %s776_s14, 0  ;;  %p68_p3 = scmp.ne.s32.totalorder %s760_s10, %s756_s9 }
   0xc   : > { %s1027_s17 = smov (%p42_p0, %s40_s17), 0  ;;  %p69_p5 = scmp.eq.s32.totalorder %s516_s15, 0 }
   0xd   : > { %p839_p4 = por %p63_p2, %p62_p1  ;;  %s50_s20 = ssub.s32 %s772_s13, %s1027_s17 }
   0xe   : > { %p128_p6 = scmp.eq.s32.totalorder %s516_s15, 1  ;;  %p53_p7 = scmp.eq.s32.totalorder %s50_s20, 0 }
   0xf   : > { %p845_p8 = por %p69_p5, %p68_p3  ;;  %p134_p10 = scmp.eq.s32.totalorder %s517_s16, 1 }
  0x10   : > { %p849_p9 = por %p128_p6, %p62_p1  ;;  %p559_p13 = scmp.lt.s32.totalorder %s776_s14, 2 }
  0x11   : > { %s854_s23 = scalar_select %p53_p7, %s764_s11, %s55_s18  }
  0x12   : > { %p856_p11 = por %p134_p10, %p68_p3  ;;  %s863_s25 = sand.u32 1, %s764_s11  }
  0x13   : > { %s520_s26 = sshll.u32 %s863_s25, 6  ;;  %s540_s27 = sshll.u32 %s772_s13, 10 }
  0x14   : > { %s169_s30 = scalar_lea.hbm %s1011_s0, %s540_s27  ;;  %s158_s3 = scalar_lea.vmem [#allocation2], %s520_s26 }
  0x15   : > { %s170_s4 = sshll.u32 %s158_s3, 4  ;;  %p872_p0 = pnand %p559_p13, %p839_p4  ;;  %s171_s4 = int_to_ptr.vmem [resolvable:$true] %s170_s4 }
  0x16   : > { %p526_p1 = scmp.ge.s32.totalorder %s776_s14, 1  ;;  %s155_s6 = scalar_lea.sflag [#allocation3], %s863_s25 }
  0x17   : > { %p638_p2 = pneg %p872_p0  ;;  %s649_s7 = scalar_lea.vmem %s171_s4, 1024 }
  0x18   : > { %p650_p3 = scmp.ne.s32.totalorder %s171_s4, %s649_s7  ;;  %s778_s8 = smov [#allocation2]  }
  0x19   : > { %s654_s15 = sshll.u32 %s778_s8, 4  ;;  %s655_s15 = int_to_ptr.vmem [resolvable:$false] %s654_s15 }
  0x1a   : > { %p652_p5 = pnand %p650_p3, %p638_p2  ;;  %s656_s16 = scalar_lea.vmem %s655_s15, 2048 }
  0x1b   : > { %p657_p4 = scmp.lt.s32.totalorder %s171_s4, %s655_s15  ;;  %p658_p7 = scmp.lt.s32.totalorder %s656_s16, %s649_s7 }
  0x1c   : > { %p653_p6 = pneg %p652_p5 }
  0x1d   : > { %p659_p10 = por %p658_p7, %p657_p4 }
  0x1f   : > { %p660_p13 = pnand %p659_p10, %p653_p6 }
  0x21   : > { %663 = shalt.err (!%p660_p13)
}
  0x22   : > { %s779_s18 = smov 128   ;;  %s780_s19 = smov 8  }
  0x23   : > { %551 = dma.hbm_to_vmem [thread:$0]  (!%p872_p0), %s169_s30, 1024, %s171_s4, %s155_s6, %s779_s18, %s779_s18, %s780_s19  }
  0x24   : > { %p204_p3 = scmp.lt.s32.totalorder %s776_s14, 3  ;;  %s523_s20 = sshll.u32 %s863_s25, 4 }
  0x25   : > { %s541_s26 = sshll.u32 %s772_s13, 8  ;;  %s184_s7 = scalar_lea.vmem [#allocation5], %s523_s20 }
  0x26   : > { %p890_p5 = pnand %p526_p1, %p204_p3  ;;  %s195_s3 = scalar_lea.hbm %s1012_s1, %s541_s26 }
  0x27   : > { %s196_s8 = sshll.u32 %s184_s7, 4  ;;  %s181_s15 = scalar_lea.sflag [#allocation6], %s863_s25  ;;  %s197_s8 = int_to_ptr.vmem [resolvable:$true] %s196_s8 }
  0x28   : > { %s677_s16 = scalar_lea.vmem %s197_s8, 256  ;;  %s781_s30 = smov [#allocation5]  }
  0x29   : > { %p678_p6 = scmp.ne.s32.totalorder %s197_s8, %s677_s16  ;;  %s682_s4 = sshll.u32 %s781_s30, 4  ;;  %s683_s4 = int_to_ptr.vmem [resolvable:$false] %s682_s4 }
  0x2a   : > { %s684_s6 = scalar_lea.vmem %s683_s4, 512  ;;  %p685_p1 = scmp.lt.s32.totalorder %s197_s8, %s683_s4 }
  0x2b   : > { %p680_p4 = pnand %p678_p6, %p638_p2  ;;  %p686_p10 = scmp.lt.s32.totalorder %s684_s6, %s677_s16 }
  0x2d   : > { %p681_p7 = pneg %p680_p4  ;;  %p687_p13 = por %p686_p10, %p685_p1 }
  0x2f   : > { %p688_p3 = pnand %p687_p13, %p681_p7 }
  0x31   : > { %691 = shalt.err (!%p688_p3)
}
  0x32   : > { %554 = dma.hbm_to_vmem [thread:$0]  (!%p872_p0), %s195_s3, 256, %s197_s8, %s181_s15, %s779_s18, %s779_s18, %s780_s19  }
  0x33   : > { %208 = sbr.rel (%p890_p5) target bundleno = 153 (0x99), region = 28  ;;  %s906_s25 = sand.u32 (!%p890_p5), 1, %s760_s10  }
  0x34   : > { %s527_s20 = sshll.u32 (!%p890_p5), %s906_s25, 6  ;;  %s211_s26 = scalar_lea.sflag (!%p890_p5), [#allocation3], %s906_s25 }
  0x35   : > { %s214_s28 = scalar_lea.vmem (!%p890_p5), [#allocation2], %s527_s20 }
  0x38   : > { %743 = dma.done.wait (%p845_p8), %s211_s26, 1024  }
  0x39   : > { %745 = vsyncadd (%p845_p8), %s211_s26, 4294966272  ;;  %s528_s5 = sshll.u32 %s906_s25, 4  ;;  %s220_s18 = scalar_lea.sflag [#allocation6], %s906_s25 }
  0x3a   : > { %s916_s19 = scalar_lea.vmem [#allocation5], %s528_s5 }
  0x3b   : > { %747 = dma.done.wait (%p845_p8), %s220_s18, 256  }
  0x3c   : > { %749 = vsyncadd (%p845_p8), %s220_s18, 4294967040  ;;  %v922_v0 = vld [vmem:[%s214_s28] sm:$0xff]  ;;  %v924_v1 = vld [vmem:[%s214_s28 + $0x8] sm:$0xff]  ;;  %s529_s21 = sshll.u32 %s906_s25, 3  ;;  %s537_s27 = sshll.u32 %s768_s12, 7 }
  0x3d   : > { %v926_v2 = vld [vmem:[%s214_s28 + $0x10] sm:$0xff]  ;;  %v928_v3 = vld [vmem:[%s214_s28 + $0x18] sm:$0xff]  ;;  %v934_v6 = vld [vmem:[%s214_s28 + $0x20] sm:$0xff]  ;;  %v283_v12 = vmax.f32 %v922_v0, 1e-12  ;;  %s248_s29 = scalar_lea.vmem [#allocation7], %s529_s21  ;;  %s403_s15 = scalar_lea.hbm %s1013_s2, %s537_s27 }
  0x3e   : > { %v269_v4 = vmax.f32 %v922_v0, %v926_v2  ;;  %v270_v5 = vmax.f32 %v924_v1, %v928_v3  ;;  %v936_v7 = vld [vmem:[%s214_s28 + $0x28] sm:$0xff]  ;;  %v938_v8 = vld [vmem:[%s214_s28 + $0x30] sm:$0xff]  ;;  %v940_v9 = vld [vmem:[%s214_s28 + $0x38] sm:$0xff]  ;;  %v284_v13 = vmax.f32 %v924_v1, 1e-12  ;;  %s405_s3 = sshll.u32 %s248_s29, 4  ;;  %s406_s3 = int_to_ptr.vmem [resolvable:$true] %s405_s3 }
  0x3f   : > { %v297_v16 = vmax.f32 %v926_v2, 1e-12  ;;  %v298_v17 = vmax.f32 %v928_v3, 1e-12  ;;  %v311_v18 = vmax.f32 %v934_v6, 1e-12 }
  0x40   : > { %v274_v10 = vmax.f32 %v269_v4, %v934_v6  ;;  %v275_v11 = vmax.f32 %v270_v5, %v936_v7  ;;  %v312_v19 = vmax.f32 %v936_v7, 1e-12  ;;  %v325_v22 = vmax.f32 %v938_v8, 1e-12  ;;  %v262_v44 = vld [vmem:[%s916_s19] sm:$0xff]  ;;  %v263_v47 = vld [vmem:[%s916_s19 + $0x8] sm:$0xff] }
  0x41   : > { %v326_v23 = vmax.f32 %v940_v9, 1e-12  ;;  %vm293_vm0 = vcmp.eq.s32.totalorder %v262_v44, 0  ;;  %vm294_vm1 = vcmp.eq.s32.totalorder %v263_v47, 0  ;;  %vm307_vm2 = vcmp.eq.s32.totalorder %v262_v44, 1  ;;  %s391_s16 = scalar_lea.sflag [#allocation4], %s906_s25 }
  0x42   : > { %v279_v14 = vmax.f32 %v274_v10, %v938_v8  ;;  %v280_v15 = vmax.f32 %v275_v11, %v940_v9  ;;  %v295_v56 = vsel %vm293_vm0, %v283_v12, 0.0  ;;  %v296_v57 = vsel %vm294_vm1, %v284_v13, 0.0  ;;  %s692_s30 = scalar_lea.vmem %s406_s3, 128  ;;  %s782_s4 = smov [#allocation7]  }
  0x43   : > { %vm308_vm3 = vcmp.eq.s32.totalorder %v263_v47, 1  ;;  %v309_v58 = vsel %vm307_vm2, %v297_v16, %v295_v56  ;;  %vm321_vm4 = vcmp.eq.s32.totalorder %v262_v44, 2  ;;  %vm322_vm5 = vcmp.eq.s32.totalorder %v263_v47, 2  ;;  %p693_p8 = scmp.ne.s32.totalorder %s406_s3, %s692_s30  ;;  %s696_s6 = sshll.u32 %s782_s4, 4  ;;  %s697_s6 = int_to_ptr.vmem [resolvable:$false] %s696_s6 }
  0x44   : > { %v952_v20 = vmax.f32 %v279_v14, 1e-12  ;;  %v954_v21 = vmax.f32 %v280_v15, 1e-12  ;;  %v310_v59 = vsel %vm308_vm3, %v298_v17, %v296_v57  ;;  %v323_v60 = vsel %vm321_vm4, %v311_v18, %v309_v58  ;;  %s698_s20 = scalar_lea.vmem %s697_s6, 256  ;;  %p699_p5 = scmp.lt.s32.totalorder %s406_s3, %s697_s6 }
  0x45   : > { %vm335_vm6 = vcmp.eq.s32.totalorder %v262_v44, 3  ;;  %v324_v61 = vsel %vm322_vm5, %v312_v19, %v310_v59  ;;  %vm336_vm7 = vcmp.eq.s32.totalorder %v263_v47, 3  ;;  %v372_v9 = vlaneseq  ;;  %p694_p0 = pnand %p693_p8, %p849_p9  ;;  %p700_p6 = scmp.lt.s32.totalorder %s698_s20, %s692_s30 }
  0x46   : > { %v285_v24 = vsub.f32 %v283_v12, %v952_v20  ;;  %v286_v25 = vsub.f32 %v284_v13, %v954_v21  ;;  %v299_v26 = vsub.f32 %v297_v16, %v952_v20  ;;  %v300_v27 = vsub.f32 %v298_v17, %v954_v21 }
  0x47   : > { %v313_v28 = vsub.f32 %v311_v18, %v952_v20  ;;  %v314_v29 = vsub.f32 %v312_v19, %v954_v21  ;;  %v327_v33 = vsub.f32 %v325_v22, %v952_v20  ;;  %v328_v35 = vsub.f32 %v326_v23, %v954_v21  ;;  %p695_p2 = pneg %p694_p0  ;;  %p701_p4 = por %p700_p6, %p699_p5 }
  0x48   : > { %v287_v30 = vmul.f32 1.442695, %v285_v24  ;;  %v289_v31 = vmul.f32 1.442695, %v286_v25  ;;  %v301_v32 = vmul.f32 1.442695, %v299_v26  ;;  %v337_v62 = vsel %vm335_vm6, %v325_v22, %v323_v60 }
  0x49   : > { %v303_v34 = vmul.f32 1.442695, %v300_v27  ;;  %v315_v36 = vmul.f32 1.442695, %v313_v28  ;;  %v317_v37 = vmul.f32 1.442695, %v314_v29  ;;  %v338_v63 = vsel %vm336_vm7, %v326_v23, %v324_v61  ;;  %p702_p7 = pnand %p701_p4, %p695_p2 }
  0x4a   : > { %612 = vpow2.f32 %v287_v30  ;;  %v329_v38 = vmul.f32 1.442695, %v327_v33  ;;  %v331_v39 = vmul.f32 1.442695, %v328_v35  ;;  %v339_v0 = vsub.f32 %v337_v62, %v952_v20 }
  0x4b   : > { %614 = vpow2.f32 %v289_v31  ;;  %v340_v2 = vsub.f32 %v338_v63, %v954_v21  ;;  %v373_v11 = vshrl.u32 %v372_v9, 7  ;;  %v376_v13 = vand.u32 127, %v372_v9 }
  0x4c   : > { %616 = vpow2.f32 %v301_v32 }
  0x4d   : > { %618 = vpow2.f32 %v303_v34  ;;  %v374_v12 = vadd.s32 8, %v373_v11  ;;  %v377_v14 = vmul.u32 128, %v373_v11 }
  0x4e   : > { %620 = vpow2.f32 %v315_v36 }
  0x4f   : > { %622 = vpow2.f32 %v317_v37  ;;  %v378_v15 = vmul.u32 128, %v374_v12  ;;  %v379_v17 = vadd.s32 %v377_v14, %v376_v13 }
  0x50   : > { %624 = vpow2.f32 %v329_v38 }
  0x51   : > { %626 = vpow2.f32 %v331_v39  ;;  %v380_v20 = vadd.s32 %v378_v15, %v376_v13  ;;  %vm382_vm8 = vcmp.lt.s32.totalorder %v379_v17, 256 }
  0x53   : > { %vm383_vm9 = vcmp.lt.s32.totalorder %v380_v20, 256 }
  0x57   : > { %v613_v40 = vpop.eup %612 }
  0x58   : > { %v615_v41 = vpop.eup %614 }
  0x59   : > { %v617_v42 = vpop.eup %616 }
  0x5a   : > { %v619_v43 = vpop.eup %618  ;;  %v305_v45 = vadd.f32 %v617_v42, %v613_v40 }
  0x5b   : > { %v621_v46 = vpop.eup %620  ;;  %v306_v48 = vadd.f32 %v619_v43, %v615_v41 }
  0x5c   : > { %v623_v49 = vpop.eup %622  ;;  %v319_v50 = vadd.f32 %v621_v46, %v305_v45 }
  0x5d   : > { %v625_v51 = vpop.eup %624  ;;  %v320_v52 = vadd.f32 %v623_v49, %v306_v48 }
  0x5e   : > { %v627_v53 = vpop.eup %626  ;;  %v333_v54 = vadd.f32 %v625_v51, %v319_v50 }
  0x5f   : > { %v334_v55 = vadd.f32 %v627_v53, %v320_v52 }
  0x60   : > { %628 = vlog2.f32 %v333_v54 }
  0x61   : > { %630 = vlog2.f32 %v334_v55 }
  0x6d   : > { %v629_v1 = vpop.eup %628 }
  0x6e   : > { %v631_v3 = vpop.eup %630  ;;  %v342_v4 = vmul.f32 0.6931472, %v629_v1 }
  0x6f   : > { %v344_v5 = vmul.f32 0.6931472, %v631_v3 }
  0x70   : > { %v345_v6 = vsub.f32 %v339_v0, %v342_v4 }
  0x71   : > { %v346_v7 = vsub.f32 %v340_v2, %v344_v5 }
  0x72   : > { %v347_v8 = vmul.f32 1.442695, %v345_v6 }
  0x73   : > { %v349_v10 = vmul.f32 1.442695, %v346_v7 }
  0x74   : > { %632 = vpow2.f32 %v347_v8 }
  0x75   : > { %634 = vpow2.f32 %v349_v10 }
  0x81   : > { %v633_v16 = vpop.eup %632 }
  0x82   : > { %v635_v18 = vpop.eup %634  ;;  %v351_v19 = vsub.f32 1.0, %v633_v16 }
  0x83   : > { %v352_v21 = vsub.f32 1.0, %v635_v18 }
  0x84   : > { %v353_v22 = vmul.f32 %v351_v19, %v345_v6 }
  0x85   : > { %v354_v23 = vmul.f32 %v352_v21, %v346_v7 }
  0x86   : > { %v355_v24 = vsub.f32 0.0, %v353_v22 }
  0x87   : > { %v356_v25 = vsub.f32 0.0, %v354_v23 }
  0x88   : > { %v384_v26 = vsel %vm382_vm8, %v355_v24, 0.0 }
  0x89   : > { %v385_v27 = vsel %vm383_vm9, %v356_v25, 0.0 }
  0x8a   : > { %v387_v28 = vadd.f32 %v385_v27, %v384_v26 }
  0x8c   : > { %389 = vst [vmem:[%s248_s29] sm:$0xff] %v387_v28 }
  0x8d   : > { %705 = shalt.err (!%p702_p7)
}
  0x8e   : > { %s706_s12 = scalar_lea.hbm %s403_s15, 128  ;;  %s710_s28 = scalar_lea.hbm %s1013_s2, 256 }
  0x8f   : > { %p707_p1 = scmp.ne.s32.totalorder %s403_s15, %s706_s12  ;;  %p711_p3 = scmp.lt.s32.totalorder %s403_s15, %s1013_s2 }
  0x90   : > { %p712_p8 = scmp.lt.s32.totalorder %s710_s28, %s706_s12 }
  0x91   : > { %p708_p10 = pnand %p707_p1, %p849_p9 }
  0x92   : > { %p713_p0 = por %p712_p8, %p711_p3 }
  0x93   : > { %p709_p13 = pneg %p708_p10 }
  0x95   : > { %p714_p12 = pnand %p713_p0, %p709_p13 }
  0x97   : > { %717 = shalt.err (!%p714_p12)
}
  0x98   : > { %546 = dma.vmem_to_hbm [thread:$0]  (%p849_p9), %s406_s3, 128, %s403_s15, %s391_s16  }
  0x99 PF: > { %s417_s19 = sand.u32 1, %s756_s9   ;;  %p1020_p2 = scmp.ge.s32.totalorder %s776_s14, 2 }
  0x9a   : > { %s418_s21 = scalar_lea.sflag [#allocation4], %s417_s19 }
  0x9b   : > { %p556_p5 = pnand %p1020_p2, %p856_p11 }
  0x9d   : > { %p557_p6 = pneg %p556_p5 }
  0x9f   : > { %751 = dma.done.wait (%p557_p6), %s418_s21, 128  }
  0xa0   : > { %753 = vsyncadd (%p557_p6), %s418_s21, 4294967168  ;;  %s21_s14 = sadd.s32 1, %s776_s14   ;;  %s1021_s9 = smov %s760_s10 }
  0xa1   : > { %p18_p4 = scmp.ge.s32.totalorder %s21_s14, 4   ;;  %s1022_s10 = smov %s764_s11 }
  0xa2   : > { %s1023_s11 = smov %s854_s23  ;;  %s1024_s12 = smov %s772_s13 }
  0xa3   : > { %s1025_s13 = smov %s1027_s17  ;;  %20 = sbr.rel (!%p18_p4) target bundleno = 8 (0x8), region = 101 }
  0xa8   :  { %423 = vsyncpa [#allocation3], 1 }
  0xa9   :  { %425 = vsyncpa [#allocation3 + $0x1], 1 }
  0xaa   :  { %426 = vsyncpa [#allocation6], 1 }
  0xab   :  { %428 = vsyncpa [#allocation6 + $0x1], 1 }
  0xac   :  { %429 = vsyncpa [#allocation4], 1 }
  0xad   :  { %431 = vsyncpa [#allocation4 + $0x1], 1 }

</bundles_post_ra>
